<compile_context>
chip_gen: v7x
topology: tpu7x:2x2x1
jax: 0.10.0
libtpu: 0.0.40
codegen_flags: <defaults>
</compile_context>

<pallas_src>
import jax
import jax.numpy as jnp
from jax.experimental import pallas as pl
from jax.experimental.pallas import tpu as pltpu

FEATURE_DIM = 1024  # self.feature_dim in RotateNet.__init__


# --------------------------------------------------------------------------
# Fused kernel:
#   euler_angle_encoder(trans_shape_code)        -> y1  (B, 3)
#   euler_angle_encoder(trans_query_shape_code)  -> y2  (B, 3)
#   SmoothL1(y1, gt), SmoothL1(y2, gt), SmoothL1(y1, y2) -> loss (3,) in SMEM
#
# euler_angle_encoder = Conv1d(1024,3,1) -> LeakyReLU(0.2) -> Conv1d(3,3,1)
# acting on (B, C, 1), i.e. a per-sample MLP:
#   y = leaky(x @ W1 + b1) @ W2 + b2
# W1 arrives in the compact PyTorch-native (out=3, in=C) layout (lane-dense
# 1024-wide rows); W2 is (in=3, out=3); biases are (1, 3).
# --------------------------------------------------------------------------
def _rotate_fused_kernel(x1_ref, x2_ref, gt_ref, w1t_ref, b1_ref, w2_ref, b2_ref,
                         y1_ref, y2_ref, loss_ref, x_all):
    B = x1_ref.shape[0]

    # Stack the two shape codes into one (2B, C) slab in VMEM scratch so the
    # whole head runs as a single pass over the batch.
    x_all[0:B, :] = x1_ref[...]
    x_all[B:2 * B, :] = x2_ref[...]
    x = x_all[...]                               # (2B, C)

    w1t = w1t_ref[...]                           # (3, C) compact, lane-dense rows
    b1 = b1_ref[...]                             # (1, 3)
    w2 = w2_ref[...]                             # (3, 3)  (in, out)
    b2 = b2_ref[...]                             # (1, 3)

    # Layer 1: Conv1d(C, 3, 1) as 3 VPU multiplies + cross-lane reduces.
    # (MXU not worth a push/pop for N=3; keeps the W1 stream at 12 KiB.)
    def chan(j):
        hj = jnp.sum(x * w1t[j:j + 1, :], axis=-1, keepdims=True) + b1[:, j:j + 1]
        return jnp.maximum(hj, 0.2 * hj)         # LeakyReLU(0.2), exact for slope<1

    h0, h1, h2 = chan(0), chan(1), chan(2)       # each (2B, 1)

    # Layer 2: Conv1d(3, 3, 1) as broadcast-FMA terms on the VPU.
    y = h0 * w2[0:1, :] + h1 * w2[1:2, :] + h2 * w2[2:3, :] + b2   # (2B, 3)

    y1 = y[0:B, :]
    y2 = y[B:2 * B, :]
    y1_ref[...] = y1.astype(y1_ref.dtype)
    y2_ref[...] = y2.astype(y2_ref.dtype)

    # lossRotate: three SmoothL1 (beta=1, mean), sharing the differences.
    gt = gt_ref[...]                             # (B, 3), no padding
    d1 = y1 - gt
    d2 = y2 - gt
    d3 = d1 - d2                                 # == y1 - y2

    def smooth_l1_sum(d):
        ad = jnp.abs(d)
        return jnp.sum(jnp.where(ad < 1.0, 0.5 * d * d, ad - 0.5))

    inv_n = 1.0 / float(B * 3)
    loss_ref[0] = smooth_l1_sum(d1) * inv_n
    loss_ref[1] = smooth_l1_sum(d2) * inv_n
    loss_ref[2] = smooth_l1_sum(d3) * inv_n


def _rotate_fused_call(x1, x2, gt, w1t, b1, w2, b2):
    B, C = x1.shape
    vmem = pl.BlockSpec(memory_space=pltpu.MemorySpace.VMEM)
    smem = pl.BlockSpec(memory_space=pltpu.MemorySpace.SMEM)
    return pl.pallas_call(
        _rotate_fused_kernel,
        in_specs=[vmem, vmem, vmem, vmem, vmem, vmem, vmem],
        out_specs=(vmem, vmem, smem),
        out_shape=(
            jax.ShapeDtypeStruct((B, 3), jnp.float32),   # trans_euler_angle_inv
            jax.ShapeDtypeStruct((B, 3), jnp.float32),   # trans_query_euler_angle_inv
            jax.ShapeDtypeStruct((3,), jnp.float32),     # three SmoothL1 losses
        ),
        scratch_shapes=[pltpu.VMEM((2 * B, C), jnp.float32)],
    )(x1, x2, gt, w1t, b1, w2, b2)


def prep_params(raw):
    """One-time param prep.

    raw["w1"]: (C, 3)  -- Conv1d(C,3,1) weight pre-transposed to (in, out).
               The kernel wants the PyTorch-native (out=3, in=C) layout
               (3 lane-dense rows), so transpose once here.
    raw["w2"]: (3, 3)  -- Conv1d(3,3,1) weight as (in, out).
    raw["b1"], raw["b2"]: (1, 3).
    """
    return {
        "w1t": jnp.asarray(raw["w1"].T, jnp.float32),          # (3, C)
        "b1": jnp.asarray(raw["b1"], jnp.float32).reshape(1, 3),
        "w2": jnp.asarray(raw["w2"], jnp.float32),              # (3, 3)
        "b2": jnp.asarray(raw["b2"], jnp.float32).reshape(1, 3),
    }


# --------------------------------------------------------------------------
# RotateNet forward (training-mode path for the module-defined compute).
# --------------------------------------------------------------------------
def rotate_net_forward(params, data):
    preds = data.setdefault("predictions", {})
    losses = data.setdefault("losses", {})

    # TODO(synk): generateUDF / encodeQueryUDF rely on getPointUDF and
    #             ResNetEncoder (external); shape codes are taken as inputs.
    trans_shape_code = preds["trans_shape_code"]
    trans_query_shape_code = preds["trans_query_shape_code"]
    gt_euler_angle_inv = data["inputs"]["euler_angle_inv"]

    y1, y2, l = _rotate_fused_call(
        trans_shape_code, trans_query_shape_code, gt_euler_angle_inv,
        params["w1t"], params["b1"], params["w2"], params["b2"])

    # encodeRotateWithGT predictions.
    preds["trans_euler_angle_inv"] = y1
    preds["trans_query_euler_angle_inv"] = y2

    # lossRotate outputs.
    losses["loss_trans_euler_angle_inv"] = l[0]
    losses["loss_trans_query_euler_angle_inv"] = l[1]
    losses["loss_partial_complete_euler_angle_inv_diff"] = l[2]

    # TODO(synk): rotateBackPoints / decodeShapeCode need transPointArray and
    #             ResNetDecoder (external) -> not reimplemented here.
    return data


if __name__ == "__main__":
    key = jax.random.PRNGKey(0)
    k_code1, k_code2, k_gt, k_w1, k_b1, k_w2, k_b2 = jax.random.split(key, 7)

    B = 2
    C = FEATURE_DIM

    # Inputs that would be produced by the (external) ResNetEncoder / point UDFs.
    trans_shape_code = jax.random.normal(k_code1, (B, C), jnp.float32)
    trans_query_shape_code = jax.random.normal(k_code2, (B, C), jnp.float32)
    gt_euler_angle_inv = jax.random.uniform(k_gt, (B, 3), jnp.float32,
                                            minval=-3.14, maxval=3.14)

    # Deterministic synthetic parameters for euler_angle_encoder.
    # (PyTorch Conv1d weight (out,in,1) is stored here pre-transposed as (in,out).)
    raw_params = {
        "w1": jax.random.normal(k_w1, (C, 3), jnp.float32) * 0.02,
        "b1": jax.random.normal(k_b1, (1, 3), jnp.float32) * 0.02,
        "w2": jax.random.normal(k_w2, (3, 3), jnp.float32) * 0.2,
        "b2": jax.random.normal(k_b2, (1, 3), jnp.float32) * 0.2,
    }
    params = prep_params(raw_params)

    data = {
        "inputs": {"euler_angle_inv": gt_euler_angle_inv},
        "predictions": {
            "trans_shape_code": trans_shape_code,
            "trans_query_shape_code": trans_query_shape_code,
        },
        "losses": {},
    }

    out = rotate_net_forward(params, data)

    jax.block_until_ready(out["predictions"]["trans_euler_angle_inv"])
    jax.block_until_ready(out["predictions"]["trans_query_euler_angle_inv"])
    jax.block_until_ready(out["losses"]["loss_trans_euler_angle_inv"])
    jax.block_until_ready(out["losses"]["loss_trans_query_euler_angle_inv"])
    jax.block_until_ready(out["losses"]["loss_partial_complete_euler_angle_inv_diff"])

    # Pure-JAX reference checks (HIGHEST precision so the reference matmul is
    # as accurate as the kernel's exact f32 VPU reduction).
    def ref_encoder(x):
        h = jnp.dot(x, raw_params["w1"],
                    precision=jax.lax.Precision.HIGHEST) + raw_params["b1"]
        h = jnp.where(h >= 0, h, 0.2 * h)
        return jnp.dot(h, raw_params["w2"],
                       precision=jax.lax.Precision.HIGHEST) + raw_params["b2"]

    def ref_smooth_l1(a, b):
        d = a - b
        ad = jnp.abs(d)
        return jnp.mean(jnp.where(ad < 1.0, 0.5 * d * d, ad - 0.5))

    ref_y1 = ref_encoder(trans_shape_code)
    ref_y2 = ref_encoder(trans_query_shape_code)

    assert jnp.allclose(out["predictions"]["trans_euler_angle_inv"],
                        ref_y1, atol=1e-4, rtol=1e-4)
    assert jnp.allclose(out["predictions"]["trans_query_euler_angle_inv"],
                        ref_y2, atol=1e-4, rtol=1e-4)
    assert jnp.allclose(out["losses"]["loss_trans_euler_angle_inv"],
                        ref_smooth_l1(ref_y1, gt_euler_angle_inv), atol=1e-5, rtol=1e-4)
    assert jnp.allclose(out["losses"]["loss_trans_query_euler_angle_inv"],
                        ref_smooth_l1(ref_y2, gt_euler_angle_inv), atol=1e-5, rtol=1e-4)
    assert jnp.allclose(out["losses"]["loss_partial_complete_euler_angle_inv_diff"],
                        ref_smooth_l1(ref_y1, ref_y2), atol=1e-5, rtol=1e-4)

    print("KERNEL_OK")
</pallas_src>

<mosaic_0001>
module attributes {stable_mosaic.version = 11 : i64} {
  func.func @_rotate_fused_kernel(%arg0: memref<2x1024xf32, #tpu.memory_space<vmem>>, %arg1: memref<2x1024xf32, #tpu.memory_space<vmem>>, %arg2: memref<2x3xf32, #tpu.memory_space<vmem>>, %arg3: memref<3x1024xf32, #tpu.memory_space<vmem>>, %arg4: memref<1x3xf32, #tpu.memory_space<vmem>>, %arg5: memref<3x3xf32, #tpu.memory_space<vmem>>, %arg6: memref<1x3xf32, #tpu.memory_space<vmem>>, %arg7: memref<2x3xf32, #tpu.memory_space<vmem>>, %arg8: memref<2x3xf32, #tpu.memory_space<vmem>>, %arg9: memref<3xf32, #tpu.memory_space<smem>>, %arg10: memref<4x1024xf32, #tpu.memory_space<vmem>>) attributes {dimension_semantics = [], scalar_prefetch = 0 : i64, scratch_operands = 1 : i64, tpu.core_type = #tpu.core_type<tc>} {
    %c0 = arith.constant 0 : index
    %c0_0 = arith.constant 0 : index
    %0 = vector.load %arg0[%c0, %c0_0] : memref<2x1024xf32, #tpu.memory_space<vmem>>, vector<2x1024xf32>
    %c0_1 = arith.constant 0 : index
    %c0_2 = arith.constant 0 : index
    %1 = vector.load %arg10[%c0_1, %c0_2] : memref<4x1024xf32, #tpu.memory_space<vmem>>, vector<2x1024xf32>
    tpu.vector_store %arg10[%c0_1, %c0_2], %0 {strides = array<i32>} : memref<4x1024xf32, #tpu.memory_space<vmem>>, vector<2x1024xf32>,
    %c0_3 = arith.constant 0 : index
    %c0_4 = arith.constant 0 : index
    %2 = vector.load %arg1[%c0_3, %c0_4] : memref<2x1024xf32, #tpu.memory_space<vmem>>, vector<2x1024xf32>
    %c2 = arith.constant 2 : index
    %c0_5 = arith.constant 0 : index
    %3 = vector.load %arg10[%c2, %c0_5] : memref<4x1024xf32, #tpu.memory_space<vmem>>, vector<2x1024xf32>
    tpu.vector_store %arg10[%c2, %c0_5], %2 {strides = array<i32>} : memref<4x1024xf32, #tpu.memory_space<vmem>>, vector<2x1024xf32>,
    %c0_6 = arith.constant 0 : index
    %c0_7 = arith.constant 0 : index
    %4 = vector.load %arg10[%c0_6, %c0_7] : memref<4x1024xf32, #tpu.memory_space<vmem>>, vector<4x1024xf32>
    %c0_8 = arith.constant 0 : index
    %c0_9 = arith.constant 0 : index
    %5 = vector.load %arg3[%c0_8, %c0_9] : memref<3x1024xf32, #tpu.memory_space<vmem>>, vector<3x1024xf32>
    %c0_10 = arith.constant 0 : index
    %c0_11 = arith.constant 0 : index
    %6 = vector.load %arg4[%c0_10, %c0_11] : memref<1x3xf32, #tpu.memory_space<vmem>>, vector<1x3xf32>
    %c0_12 = arith.constant 0 : index
    %c0_13 = arith.constant 0 : index
    %7 = vector.load %arg5[%c0_12, %c0_13] : memref<3x3xf32, #tpu.memory_space<vmem>>, vector<3x3xf32>
    %c0_14 = arith.constant 0 : index
    %c0_15 = arith.constant 0 : index
    %8 = vector.load %arg6[%c0_14, %c0_15] : memref<1x3xf32, #tpu.memory_space<vmem>>, vector<1x3xf32>
    %9 = vector.extract_strided_slice %5 {offsets = [0, 0], sizes = [1, 1024], strides = [1, 1]} : vector<3x1024xf32> to vector<1x1024xf32>
    %10 = vector.broadcast %9 : vector<1x1024xf32> to vector<4x1024xf32>
    %11 = arith.mulf %4, %10 : vector<4x1024xf32>
    %cst = arith.constant dense<0.000000e+00> : vector<4xf32>
    %12 = vector.multi_reduction <add>, %11, %cst [1] : vector<4x1024xf32> to vector<4xf32>
    %13 = vector.shape_cast %12 : vector<4xf32> to vector<4x1xf32>
    %14 = vector.extract_strided_slice %6 {offsets = [0, 0], sizes = [1, 1], strides = [1, 1]} : vector<1x3xf32> to vector<1x1xf32>
    %15 = vector.broadcast %14 : vector<1x1xf32> to vector<4x1xf32>
    %16 = arith.addf %13, %15 : vector<4x1xf32>
    %cst_16 = arith.constant 2.000000e-01 : f32
    %17 = vector.broadcast %cst_16 : f32 to vector<4x1xf32>
    %18 = arith.mulf %17, %16 : vector<4x1xf32>
    %19 = arith.maximumf %16, %18 : vector<4x1xf32>
    %20 = vector.extract_strided_slice %5 {offsets = [1, 0], sizes = [1, 1024], strides = [1, 1]} : vector<3x1024xf32> to vector<1x1024xf32>
    %21 = vector.broadcast %20 : vector<1x1024xf32> to vector<4x1024xf32>
    %22 = arith.mulf %4, %21 : vector<4x1024xf32>
    %cst_17 = arith.constant dense<0.000000e+00> : vector<4xf32>
    %23 = vector.multi_reduction <add>, %22, %cst_17 [1] : vector<4x1024xf32> to vector<4xf32>
    %24 = vector.shape_cast %23 : vector<4xf32> to vector<4x1xf32>
    %25 = vector.extract_strided_slice %6 {offsets = [0, 1], sizes = [1, 1], strides = [1, 1]} : vector<1x3xf32> to vector<1x1xf32>
    %26 = vector.broadcast %25 : vector<1x1xf32> to vector<4x1xf32>
    %27 = arith.addf %24, %26 : vector<4x1xf32>
    %cst_18 = arith.constant 2.000000e-01 : f32
    %28 = vector.broadcast %cst_18 : f32 to vector<4x1xf32>
    %29 = arith.mulf %28, %27 : vector<4x1xf32>
    %30 = arith.maximumf %27, %29 : vector<4x1xf32>
    %31 = vector.extract_strided_slice %5 {offsets = [2, 0], sizes = [1, 1024], strides = [1, 1]} : vector<3x1024xf32> to vector<1x1024xf32>
    %32 = vector.broadcast %31 : vector<1x1024xf32> to vector<4x1024xf32>
    %33 = arith.mulf %4, %32 : vector<4x1024xf32>
    %cst_19 = arith.constant dense<0.000000e+00> : vector<4xf32>
    %34 = vector.multi_reduction <add>, %33, %cst_19 [1] : vector<4x1024xf32> to vector<4xf32>
    %35 = vector.shape_cast %34 : vector<4xf32> to vector<4x1xf32>
    %36 = vector.extract_strided_slice %6 {offsets = [0, 2], sizes = [1, 1], strides = [1, 1]} : vector<1x3xf32> to vector<1x1xf32>
    %37 = vector.broadcast %36 : vector<1x1xf32> to vector<4x1xf32>
    %38 = arith.addf %35, %37 : vector<4x1xf32>
    %cst_20 = arith.constant 2.000000e-01 : f32
    %39 = vector.broadcast %cst_20 : f32 to vector<4x1xf32>
    %40 = arith.mulf %39, %38 : vector<4x1xf32>
    %41 = arith.maximumf %38, %40 : vector<4x1xf32>
    %42 = vector.extract_strided_slice %7 {offsets = [0, 0], sizes = [1, 3], strides = [1, 1]} : vector<3x3xf32> to vector<1x3xf32>
    %43 = vector.broadcast %19 : vector<4x1xf32> to vector<4x3xf32>
    %44 = vector.broadcast %42 : vector<1x3xf32> to vector<4x3xf32>
    %45 = arith.mulf %43, %44 : vector<4x3xf32>
    %46 = vector.extract_strided_slice %7 {offsets = [1, 0], sizes = [1, 3], strides = [1, 1]} : vector<3x3xf32> to vector<1x3xf32>
    %47 = vector.broadcast %30 : vector<4x1xf32> to vector<4x3xf32>
    %48 = vector.broadcast %46 : vector<1x3xf32> to vector<4x3xf32>
    %49 = arith.mulf %47, %48 : vector<4x3xf32>
    %50 = arith.addf %45, %49 : vector<4x3xf32>
    %51 = vector.extract_strided_slice %7 {offsets = [2, 0], sizes = [1, 3], strides = [1, 1]} : vector<3x3xf32> to vector<1x3xf32>
    %52 = vector.broadcast %41 : vector<4x1xf32> to vector<4x3xf32>
    %53 = vector.broadcast %51 : vector<1x3xf32> to vector<4x3xf32>
    %54 = arith.mulf %52, %53 : vector<4x3xf32>
    %55 = arith.addf %50, %54 : vector<4x3xf32>
    %56 = vector.broadcast %8 : vector<1x3xf32> to vector<4x3xf32>
    %57 = arith.addf %55, %56 : vector<4x3xf32>
    %58 = vector.extract_strided_slice %57 {offsets = [0, 0], sizes = [2, 3], strides = [1, 1]} : vector<4x3xf32> to vector<2x3xf32>
    %59 = vector.extract_strided_slice %57 {offsets = [2, 0], sizes = [2, 3], strides = [1, 1]} : vector<4x3xf32> to vector<2x3xf32>
    %c0_21 = arith.constant 0 : index
    %c0_22 = arith.constant 0 : index
    %60 = vector.load %arg7[%c0_21, %c0_22] : memref<2x3xf32, #tpu.memory_space<vmem>>, vector<2x3xf32>
    tpu.vector_store %arg7[%c0_21, %c0_22], %58 {strides = array<i32>} : memref<2x3xf32, #tpu.memory_space<vmem>>, vector<2x3xf32>,
    %c0_23 = arith.constant 0 : index
    %c0_24 = arith.constant 0 : index
    %61 = vector.load %arg8[%c0_23, %c0_24] : memref<2x3xf32, #tpu.memory_space<vmem>>, vector<2x3xf32>
    tpu.vector_store %arg8[%c0_23, %c0_24], %59 {strides = array<i32>} : memref<2x3xf32, #tpu.memory_space<vmem>>, vector<2x3xf32>,
    %c0_25 = arith.constant 0 : index
    %c0_26 = arith.constant 0 : index
    %62 = vector.load %arg2[%c0_25, %c0_26] : memref<2x3xf32, #tpu.memory_space<vmem>>, vector<2x3xf32>
    %63 = arith.subf %58, %62 : vector<2x3xf32>
    %64 = arith.subf %59, %62 : vector<2x3xf32>
    %65 = arith.subf %63, %64 : vector<2x3xf32>
    %66 = math.absf %63 : vector<2x3xf32>
    %cst_27 = arith.constant 1.000000e+00 : f32
    %67 = vector.broadcast %cst_27 : f32 to vector<2x3xf32>
    %68 = arith.cmpf olt, %66, %67 : vector<2x3xf32>
    %cst_28 = arith.constant 5.000000e-01 : f32
    %69 = vector.broadcast %cst_28 : f32 to vector<2x3xf32>
    %70 = arith.mulf %69, %63 : vector<2x3xf32>
    %71 = arith.mulf %70, %63 : vector<2x3xf32>
    %cst_29 = arith.constant 5.000000e-01 : f32
    %72 = vector.broadcast %cst_29 : f32 to vector<2x3xf32>
    %73 = arith.subf %66, %72 : vector<2x3xf32>
    %74 = arith.select %68, %71, %73 : vector<2x3xi1>, vector<2x3xf32>
    %75 = vector.shape_cast %74 : vector<2x3xf32> to vector<1x2x3xf32>
    %cst_30 = arith.constant dense<0.000000e+00> : vector<1xf32>
    %76 = vector.multi_reduction <add>, %75, %cst_30 [1, 2] : vector<1x2x3xf32> to vector<1xf32>
    %77 = vector.shape_cast %76 : vector<1xf32> to vector<1x1x1xf32>
    %78 = vector.extract %77[0, 0, 0] : f32 from vector<1x1x1xf32>
    %cst_31 = arith.constant 0.166666672 : f32
    %79 = arith.mulf %78, %cst_31 : f32
    %c0_32 = arith.constant 0 : index
    %80 = memref.load %arg9[%c0_32] : memref<3xf32, #tpu.memory_space<smem>>
    memref.store %79, %arg9[%c0_32] : memref<3xf32, #tpu.memory_space<smem>>
    %81 = math.absf %64 : vector<2x3xf32>
    %cst_33 = arith.constant 1.000000e+00 : f32
    %82 = vector.broadcast %cst_33 : f32 to vector<2x3xf32>
    %83 = arith.cmpf olt, %81, %82 : vector<2x3xf32>
    %cst_34 = arith.constant 5.000000e-01 : f32
    %84 = vector.broadcast %cst_34 : f32 to vector<2x3xf32>
    %85 = arith.mulf %84, %64 : vector<2x3xf32>
    %86 = arith.mulf %85, %64 : vector<2x3xf32>
    %cst_35 = arith.constant 5.000000e-01 : f32
    %87 = vector.broadcast %cst_35 : f32 to vector<2x3xf32>
    %88 = arith.subf %81, %87 : vector<2x3xf32>
    %89 = arith.select %83, %86, %88 : vector<2x3xi1>, vector<2x3xf32>
    %90 = vector.shape_cast %89 : vector<2x3xf32> to vector<1x2x3xf32>
    %cst_36 = arith.constant dense<0.000000e+00> : vector<1xf32>
    %91 = vector.multi_reduction <add>, %90, %cst_36 [1, 2] : vector<1x2x3xf32> to vector<1xf32>
    %92 = vector.shape_cast %91 : vector<1xf32> to vector<1x1x1xf32>
    %93 = vector.extract %92[0, 0, 0] : f32 from vector<1x1x1xf32>
    %cst_37 = arith.constant 0.166666672 : f32
    %94 = arith.mulf %93, %cst_37 : f32
    %c1 = arith.constant 1 : index
    %95 = memref.load %arg9[%c1] : memref<3xf32, #tpu.memory_space<smem>>
    memref.store %94, %arg9[%c1] : memref<3xf32, #tpu.memory_space<smem>>
    %96 = math.absf %65 : vector<2x3xf32>
    %cst_38 = arith.constant 1.000000e+00 : f32
    %97 = vector.broadcast %cst_38 : f32 to vector<2x3xf32>
    %98 = arith.cmpf olt, %96, %97 : vector<2x3xf32>
    %cst_39 = arith.constant 5.000000e-01 : f32
    %99 = vector.broadcast %cst_39 : f32 to vector<2x3xf32>
    %100 = arith.mulf %99, %65 : vector<2x3xf32>
    %101 = arith.mulf %100, %65 : vector<2x3xf32>
    %cst_40 = arith.constant 5.000000e-01 : f32
    %102 = vector.broadcast %cst_40 : f32 to vector<2x3xf32>
    %103 = arith.subf %96, %102 : vector<2x3xf32>
    %104 = arith.select %98, %101, %103 : vector<2x3xi1>, vector<2x3xf32>
    %105 = vector.shape_cast %104 : vector<2x3xf32> to vector<1x2x3xf32>
    %cst_41 = arith.constant dense<0.000000e+00> : vector<1xf32>
    %106 = vector.multi_reduction <add>, %105, %cst_41 [1, 2] : vector<1x2x3xf32> to vector<1xf32>
    %107 = vector.shape_cast %106 : vector<1xf32> to vector<1x1x1xf32>
    %108 = vector.extract %107[0, 0, 0] : f32 from vector<1x1x1xf32>
    %cst_42 = arith.constant 0.166666672 : f32
    %109 = arith.mulf %108, %cst_42 : f32
    %c2_43 = arith.constant 2 : index
    %110 = memref.load %arg9[%c2_43] : memref<3xf32, #tpu.memory_space<smem>>
    memref.store %109, %arg9[%c2_43] : memref<3xf32, #tpu.memory_space<smem>>
    return
  }
}

</mosaic_0001>

<bundles_post_ra>
// kernel: tpu_custom_call.1
= control target key start
LH: loop header
LB: loop body
LE: loop exit
PB: predicated region body
PF: predicated region fallthrough
CT: control target
= control target key end

     0   :  { %15 = vsyncpa [#allocation4], 0  ;;  %s1143_s0 = inlined_call_operand.hbm [shape: f32[2,1024], index: 0, kind: input, shape index: {}]   ;;  %s1144_s1 = inlined_call_operand.hbm [shape: f32[2,1024], index: 1, kind: input, shape index: {}]   ;;  %s1145_s2 = inlined_call_operand.vmem [shape: f32[2,3], index: 2, kind: input, shape index: {}]   ;;  %s1146_s3 = inlined_call_operand.hbm [shape: f32[3,1024], index: 3, kind: input, shape index: {}]   ;;  %s1147_s4 = inlined_call_operand.vmem [shape: f32[1,3], index: 4, kind: input, shape index: {}]   ;;  %s1148_s5 = inlined_call_operand.vmem [shape: f32[3,3], index: 5, kind: input, shape index: {}]   ;;  %s1149_s6 = inlined_call_operand.vmem [shape: f32[1,3], index: 6, kind: input, shape index: {}]   ;;  %s1150_s7 = inlined_call_operand.hbm [shape: f32[2,3], index: 7, kind: output, shape index: {0}]   ;;  %s1151_s8 = inlined_call_operand.hbm [shape: f32[2,3], index: 8, kind: output, shape index: {1}]   ;;  %s1152_s9 = inlined_call_operand.hbm [shape: f32[3], index: 9, kind: output, shape index: {2}]  }
   0x1   :  { %16 = vsyncpa [#allocation8], 0 }
   0x2   :  { %17 = vsyncpa [#allocation5], 0 }
   0x3   :  { %18 = vsyncpa [#allocation12], 0 }
   0x4   :  { %19 = vsyncpa [#allocation6], 0  ;;  %s867_s30 = smov [#allocation7]   ;;  %s868_s11 = smov [#allocation3]  }
   0x5   :  { %s36_s10 = sshll.u32 %s867_s30, 4  ;;  %s26_s12 = sshll.u32 %s868_s11, 4  ;;  %s37_s10 = int_to_ptr.vmem [resolvable:$true] %s36_s10  ;;  %s27_s12 = int_to_ptr.vmem [resolvable:$true] %s26_s12 }
   0x6   :  { %s737_s15 = scalar_lea.hbm %s1144_s1, 256 }
   0x7   :  { %p738_p0 = scmp.ne.s32.totalorder %s1144_s1, %s737_s15  ;;  %p741_p1 = scmp.lt.u32.totalorder %s737_s15, %s1144_s1 }
   0x9   :  { %p743_p2 = pnand %p741_p1, %p738_p0 }
   0xb   :  { %746 = shalt.err (!%p743_p2)
}
   0xc   :  { %s747_s20 = scalar_lea.vmem %s37_s10, 256  ;;  %p752_p4 = scmp.lt.s32.totalorder %s37_s10, %s37_s10 }
   0xd   :  { %p748_p3 = scmp.ne.s32.totalorder %s37_s10, %s747_s20  ;;  %p753_p5 = scmp.lt.s32.totalorder %s747_s20, %s747_s20 }
   0xf   :  { %p754_p6 = por %p753_p5, %p752_p4 }
  0x11   :  { %p755_p7 = pnand %p754_p6, %p748_p3 }
  0x13   :  { %758 = shalt.err (!%p755_p7)
}
  0x14   :  { %39 = dma.hbm_to_vmem [thread:$0]  %s1144_s1, 256, %s37_s10, [#allocation8]  }
  0x15   :  { %s759_s25 = scalar_lea.hbm %s1143_s0, 256 }
  0x16   :  { %p760_p8 = scmp.ne.s32.totalorder %s1143_s0, %s759_s25  ;;  %p763_p9 = scmp.lt.u32.totalorder %s759_s25, %s1143_s0 }
  0x18   :  { %p765_p10 = pnand %p763_p9, %p760_p8 }
  0x1a   :  { %768 = shalt.err (!%p765_p10)
}
  0x1b   :  { %s769_s30 = scalar_lea.vmem %s27_s12, 256  ;;  %p774_p12 = scmp.lt.s32.totalorder %s27_s12, %s27_s12 }
  0x1c   :  { %p770_p11 = scmp.ne.s32.totalorder %s27_s12, %s769_s30  ;;  %p775_p13 = scmp.lt.s32.totalorder %s769_s30, %s769_s30 }
  0x1e   :  { %p776_p0 = por %p775_p13, %p774_p12 }
  0x20   :  { %p777_p1 = pnand %p776_p0, %p770_p11 }
  0x22   :  { %780 = shalt.err (!%p777_p1)
}
  0x23   :  { %29 = dma.hbm_to_vmem [thread:$0]  %s1143_s0, 256, %s27_s12, [#allocation4]  }
  0x24   :  { %s869_s11 = smov [#allocation9]   ;;  %s781_s16 = scalar_lea.hbm %s1146_s3, 512 }
  0x25   :  { %s48_s13 = sshll.u32 %s869_s11, 4  ;;  %p782_p2 = scmp.ne.s32.totalorder %s1146_s3, %s781_s16  ;;  %s49_s13 = int_to_ptr.vmem [resolvable:$true] %s48_s13 }
  0x26   :  { %p785_p3 = scmp.lt.u32.totalorder %s781_s16, %s1146_s3 }
  0x28   :  { %p787_p4 = pnand %p785_p3, %p782_p2 }
  0x2a   :  { %790 = shalt.err (!%p787_p4)
}
  0x2b   :  { %s791_s21 = scalar_lea.vmem %s49_s13, 512  ;;  %p796_p6 = scmp.lt.s32.totalorder %s49_s13, %s49_s13 }
  0x2c   :  { %p792_p5 = scmp.ne.s32.totalorder %s49_s13, %s791_s21  ;;  %p797_p7 = scmp.lt.s32.totalorder %s791_s21, %s791_s21 }
  0x2e   :  { %p798_p8 = por %p797_p7, %p796_p6 }
  0x30   :  { %p799_p9 = pnand %p798_p8, %p792_p5 }
  0x32   :  { %802 = shalt.err (!%p799_p9)
}
  0x33   :  { %51 = dma.hbm_to_vmem [thread:$0]  %s1146_s3, 512, %s49_s13, [#allocation8]  }
  0x34   :  { %857 = dma.done.wait [#allocation4], 256  }
  0x35   :  { %858 = vsyncadd [#allocation4], 4294967040 }
  0x36   :  { %859 = dma.done.wait [#allocation8], 768  }
  0x37   :  { %860 = vsyncadd [#allocation8], 4294966528  ;;  %v166_v0 = vlaneseq  ;;  %v67_v4 = vld [vmem:[#allocation3] sm:$0xff]  ;;  %v68_v5 = vld [vmem:[#allocation3 + $0x8] sm:$0xff]  ;;  %vm270_vm0 = vcmask 1043456   ;;  %vm584_vm1 = vcmask 17408  }
  0x38   :  { %v109_v6 = vld [vmem:[#allocation7] sm:$0xff]  ;;  %v71_v8 = vcombine.high %v67_v4, %v67_v4  ;;  %v86_v9 = vcombine.high %v68_v5, %v68_v5  ;;  %701 = vst.sshfl [vmem:[#allocation2] sm:$0xf pattern:$0x76325410] %v67_v4  ;;  %v110_v10 = vld [vmem:[#allocation7 + $0x8] sm:$0xff] }
  0x39   :  { %v962_v1 = vshrl.u32 %v166_v0, 7  ;;  %703 = vst.sshfl [vmem:[#allocation2 + $0x10] sm:$0xf pattern:$0x76325410] %v68_v5  ;;  %v113_v11 = vcombine.low %v109_v6, %v109_v6  ;;  %v128_v15 = vcombine.low %v110_v10, %v110_v10  ;;  %vm586_vm2 = vcmask 19458  }
  0x3a   :  { %706 = vst.sshfl [vmem:[#allocation2 + $0x8] sm:$0xf0 pattern:$0x76325410] %v109_v6  ;;  %v971_v12 = vld [vmem:[#allocation9] sm:$0x77] }
  0x3b   :  { %v965_v2 = vsub.s32 0, %v962_v1  ;;  %v172_v3 = vsub.s32 4, %v962_v1  ;;  %v969_v7 = vsub.s32 2, %v962_v1  ;;  %v973_v13 = vld [vmem:[#allocation9 + $0x8] sm:$0x77]  ;;  %v427_v14 = vsub.s32 6, %v962_v1 }
  0x3c   :  { %708 = vst.sshfl [vmem:[#allocation2 + $0x18] sm:$0xf0 pattern:$0x76325410] %v110_v10  ;;  %v976_v16 = vld [vmem:[#allocation9 + $0x10] sm:$0x77] }
  0x3d   :  { %v978_v17 = vld [vmem:[#allocation9 + $0x18] sm:$0x77]  ;;  %v169_v18 = vrot.slane %v971_v12, %v965_v2  ;;  %v173_v19 = vrot.slane %v971_v12, %v172_v3  ;;  %v177_v20 = vrot.slane %v973_v13, %v965_v2  ;;  %702 = vst.sshfl [vmem:[#allocation2 + $0x8] sm:$0xf pattern:$0x76325410] %v71_v8  ;;  %v181_v21 = vrot.slane %v973_v13, %v172_v3 }
  0x3e   :  { %704 = vst.sshfl [vmem:[#allocation2 + $0x18] sm:$0xf pattern:$0x76325410] %v86_v9  ;;  %v185_v22 = vrot.slane %v976_v16, %v965_v2  ;;  %v189_v23 = vrot.slane %v976_v16, %v172_v3  ;;  %v193_v24 = vrot.slane %v978_v17, %v965_v2  ;;  %v197_v25 = vrot.slane %v978_v17, %v172_v3 }
  0x3f   :  { %705 = vst.sshfl [vmem:[#allocation2] sm:$0xf0 pattern:$0x76325410] %v113_v11  ;;  %v209_v26 = vrot.slane %v169_v18, %v965_v2  ;;  %v213_v27 = vrot.slane %v173_v19, %v965_v2  ;;  %v217_v28 = vrot.slane %v177_v20, %v965_v2  ;;  %v221_v29 = vrot.slane %v181_v21, %v965_v2 }
  0x40   :  { %707 = vst.sshfl [vmem:[#allocation2 + $0x10] sm:$0xf0 pattern:$0x76325410] %v128_v15  ;;  %v225_v30 = vrot.slane %v185_v22, %v965_v2  ;;  %v229_v31 = vrot.slane %v189_v23, %v965_v2  ;;  %v233_v32 = vrot.slane %v193_v24, %v965_v2  ;;  %v237_v33 = vrot.slane %v197_v25, %v965_v2 }
  0x41   :  { %v246_v34 = vcombine.low %v209_v26, %v213_v27  ;;  %v424_v35 = vrot.slane %v971_v12, %v969_v7  ;;  %v428_v36 = vrot.slane %v971_v12, %v427_v14  ;;  %v247_v37 = vcombine.low %v217_v28, %v221_v29 }
  0x42   :  { %v248_v38 = vcombine.low %v225_v30, %v229_v31  ;;  %v432_v39 = vrot.slane %v973_v13, %v969_v7  ;;  %v436_v40 = vrot.slane %v973_v13, %v427_v14  ;;  %v249_v41 = vcombine.low %v233_v32, %v237_v33 }
  0x43   :  { %v440_v42 = vrot.slane %v976_v16, %v969_v7  ;;  %v444_v43 = vrot.slane %v976_v16, %v427_v14  ;;  %v448_v44 = vrot.slane %v978_v17, %v969_v7  ;;  %v452_v45 = vrot.slane %v978_v17, %v427_v14 }
  0x44   :  { %v464_v46 = vrot.slane %v424_v35, %v969_v7  ;;  %v468_v47 = vrot.slane %v428_v36, %v969_v7  ;;  %v472_v48 = vrot.slane %v432_v39, %v969_v7  ;;  %v1017_v50 = vld [vmem:[#allocation2 + $0x8] sm:$0xff]  ;;  %v476_v52 = vrot.slane %v436_v40, %v969_v7 }
  0x45   :  { %v1019_v51 = vld [vmem:[#allocation2 + $0x18] sm:$0xff]  ;;  %v480_v53 = vrot.slane %v440_v42, %v969_v7  ;;  %v484_v54 = vrot.slane %v444_v43, %v969_v7  ;;  %v488_v55 = vrot.slane %v448_v44, %v969_v7  ;;  %v255_v58 = vmul.f32 %v247_v37, %v1017_v50 }
  0x46   :  { %v1015_v49 = vld [vmem:[#allocation2] sm:$0xff]  ;;  %v257_v59 = vmul.f32 %v249_v41, %v1019_v51  ;;  %v492_v60 = vrot.slane %v452_v45, %v969_v7  ;;  %v501_v62 = vcombine.low %v464_v46, %v468_v47  ;;  %v502_v63 = vcombine.low %v472_v48, %v476_v52 }
  0x47   :  { %v1025_v56 = vld [vmem:[#allocation2 + $0x10] sm:$0xff]  ;;  %v254_v57 = vmul.f32 %v246_v34, %v1015_v49  ;;  %v503_v0 = vcombine.low %v480_v53, %v484_v54  ;;  %v263_v4 = vcombine.high %v255_v58, %v255_v58  ;;  %v274_v9 = vsel %vm270_vm0, %v255_v58, 0.0 }
  0x48   :  { %v256_v61 = vmul.f32 %v248_v38, %v1025_v56  ;;  %v265_v5 = vcombine.high %v257_v59, %v257_v59  ;;  %v1035_v10 = vsub.s32 1, %v962_v1  ;;  %v303_v11 = vsub.s32 5, %v962_v1 }
  0x49   :  { %v262_v3 = vcombine.high %v254_v57, %v254_v57  ;;  %v271_v6 = vsel %vm270_vm0, %v254_v57, 0.0  ;;  %v282_v18 = vsel %vm270_vm0, %v257_v59, 0.0  ;;  %v504_v19 = vcombine.low %v488_v55, %v492_v60 }
  0x4a   :  { %v264_v8 = vcombine.high %v256_v61, %v256_v61  ;;  %v278_v15 = vsel %vm270_vm0, %v256_v61, 0.0  ;;  %v276_v21 = vsel %vm270_vm0, %v263_v4, 0.0  ;;  %v509_v22 = vmul.f32 %v501_v62, %v1015_v49 }
  0x4b   :  { %v272_v14 = vsel %vm270_vm0, %v262_v3, 0.0  ;;  %v510_v23 = vmul.f32 %v502_v63, %v1017_v50  ;;  %v284_v25 = vsel %vm270_vm0, %v265_v5, 0.0  ;;  %v511_v1 = vmul.f32 %v503_v0, %v1025_v56 }
  0x4c   :  { %v273_v20 = vadd.f32 %v272_v14, %v271_v6  ;;  %v280_v24 = vsel %vm270_vm0, %v264_v8, 0.0  ;;  %v512_v26 = vmul.f32 %v504_v19, %v1019_v51  ;;  %v517_v28 = vcombine.high %v509_v22, %v509_v22 }
  0x4d   :  { %v518_v29 = vcombine.high %v510_v23, %v510_v23  ;;  %v525_v30 = vsel %vm270_vm0, %v509_v22, 0.0  ;;  %v519_v31 = vcombine.high %v511_v1, %v511_v1  ;;  %v300_v33 = vrot.slane %v971_v12, %v1035_v10 }
  0x4e   :  { %v275_v27 = vadd.f32 %v274_v9, %v273_v20  ;;  %v520_v32 = vcombine.high %v512_v26, %v512_v26  ;;  %v304_v34 = vrot.slane %v971_v12, %v303_v11  ;;  %v526_v36 = vsel %vm270_vm0, %v517_v28, 0.0 }
  0x4f   :  { %v528_v37 = vsel %vm270_vm0, %v510_v23, 0.0  ;;  %v532_v38 = vsel %vm270_vm0, %v511_v1, 0.0  ;;  %v527_v39 = vadd.f32 %v526_v36, %v525_v30  ;;  %v530_v40 = vsel %vm270_vm0, %v518_v29, 0.0  ;;  %v709_v36 = vld [vmem:[%s1147_s4] ss:$0 sm:$0xff] }
  0x50   :  { %v277_v35 = vadd.f32 %v276_v21, %v275_v27  ;;  %v534_v41 = vsel %vm270_vm0, %v519_v31, 0.0  ;;  %v308_v42 = vrot.slane %v973_v13, %v1035_v10  ;;  %v312_v44 = vrot.slane %v973_v13, %v303_v11 }
  0x51   :  { %v316_v12 = vrot.slane %v976_v16, %v1035_v10  ;;  %v320_v45 = vrot.slane %v976_v16, %v303_v11  ;;  %v529_v46 = vadd.f32 %v528_v37, %v527_v39  ;;  %v324_v47 = vrot.slane %v978_v17, %v1035_v10 }
  0x52   :  { %v279_v43 = vadd.f32 %v278_v15, %v277_v35  ;;  %v328_v48 = vrot.slane %v978_v17, %v303_v11  ;;  %v340_v52 = vrot.slane %v300_v33, %v1035_v10  ;;  %v344_v54 = vrot.slane %v304_v34, %v1035_v10 }
  0x53   :  { %v348_v55 = vrot.slane %v308_v42, %v1035_v10  ;;  %v352_v13 = vrot.slane %v312_v44, %v1035_v10  ;;  %v531_v57 = vadd.f32 %v530_v40, %v529_v46  ;;  %v356_v58 = vrot.slane %v316_v12, %v1035_v10 }
  0x54   :  { %v281_v53 = vadd.f32 %v280_v24, %v279_v43  ;;  %v360_v16 = vrot.slane %v320_v45, %v1035_v10  ;;  %v364_v59 = vrot.slane %v324_v47, %v1035_v10  ;;  %v368_v61 = vrot.slane %v328_v48, %v1035_v10 }
  0x55   :  { %v377_v17 = vcombine.low %v340_v52, %v344_v54  ;;  %v378_v62 = vcombine.low %v348_v55, %v352_v13  ;;  %v533_v63 = vadd.f32 %v532_v38, %v531_v57  ;;  %v536_v4 = vsel %vm270_vm0, %v512_v26, 0.0 }
  0x56   :  { %v283_v60 = vadd.f32 %v282_v18, %v281_v53  ;;  %v379_v0 = vcombine.low %v356_v58, %v360_v16  ;;  %v538_v9 = vsel %vm270_vm0, %v520_v32, 0.0  ;;  %v380_v11 = vcombine.low %v364_v59, %v368_v61  ;;  %v160_v53 = vld [vmem:[%s1148_s5] sm:$0x7] }
  0x57   :  { %v385_v5 = vmul.f32 %v377_v17, %v1015_v49  ;;  %v386_v6 = vmul.f32 %v378_v62, %v1017_v50  ;;  %v535_v8 = vadd.f32 %v534_v41, %v533_v63  ;;  %v871_v35 = vmov 1   ;;  %v588_v61 = vld [vmem:[%s1145_s2] sm:$0x3]  ;;  %s873_s2 = smov [#allocation10]  }
  0x58   :  { %v285_v3 = vadd.f32 %v284_v25, %v283_v60  ;;  %v387_v14 = vmul.f32 %v379_v0, %v1025_v56  ;;  %v388_v50 = vmul.f32 %v380_v11, %v1019_v51  ;;  %v870_v51 = vmov 0   ;;  %730 = vset.pattern.permute.xlu0 %v871_v35  ;;  %v710_v62 = vld [vmem:[%s1149_s6] ss:$0 sm:$0xff]  ;;  %s664_s5 = sshll.u32 %s873_s2, 4  ;;  %s874_s6 = smov [#allocation11]   ;;  %s665_s5 = int_to_ptr.vmem [resolvable:$true] %s664_s5 }
  0x59   :  { %v393_v15 = vcombine.high %v385_v5, %v385_v5  ;;  %v394_v18 = vcombine.high %v386_v6, %v386_v6  ;;  %v401_v19 = vsel %vm270_vm0, %v385_v5, 0.0  ;;  %v537_v20 = vadd.f32 %v536_v4, %v535_v8  ;;  %729 = vset.pattern.permute.xlu1 %v870_v51  ;;  %s674_s28 = sshll.u32 %s874_s6, 4  ;;  %s803_s29 = scalar_lea.vmem %s665_s5, 32  ;;  %s675_s28 = int_to_ptr.vmem [resolvable:$true] %s674_s28 }
  0x5a   :  { %286 = vadd.xlane.f32.xlu0 %v285_v3  ;;  %v404_v22 = vsel %vm270_vm0, %v386_v6, 0.0  ;;  %v395_v24 = vcombine.high %v387_v14, %v387_v14  ;;  %v408_v56 = vsel %vm270_vm0, %v387_v14, 0.0  ;;  %v396_v27 = vcombine.high %v388_v50, %v388_v50  ;;  %p804_p10 = scmp.ne.s32.totalorder %s665_s5, %s803_s29  ;;  %p808_p11 = scmp.lt.s32.totalorder %s665_s5, %s665_s5 }
  0x5b   :  { %v402_v21 = vsel %vm270_vm0, %v393_v15, 0.0  ;;  %v539_v23 = vadd.f32 %v538_v9, %v537_v20  ;;  %v406_v25 = vsel %vm270_vm0, %v394_v18, 0.0  ;;  %v412_v30 = vsel %vm270_vm0, %v388_v50, 0.0  ;;  %p809_p12 = scmp.lt.s32.totalorder %s803_s29, %s803_s29 }
  0x5c   :  { %v403_v49 = vadd.f32 %v402_v21, %v401_v19  ;;  %v410_v28 = vsel %vm270_vm0, %v395_v24, 0.0  ;;  %v414_v32 = vsel %vm270_vm0, %v396_v27, 0.0  ;;  %v872_v12 = vmov 2  }
  0x5d   :  { %540 = vadd.xlane.f32.xlu1 %v539_v23  ;;  %v553_v54 = vrot.slane %v160_v53, %v965_v2  ;;  %v563_v55 = vrot.slane %v160_v53, %v1035_v10  ;;  %v574_v13 = vrot.slane %v160_v53, %v969_v7  ;;  %v591_v63 = vrot.slane %v588_v61, 6  ;;  %p810_p13 = por %p809_p12, %p808_p11 }
  0x5e   :  { %v405_v1 = vadd.f32 %v404_v22, %v403_v49 }
  0x5f   :  { %p811_p0 = pnand %p810_p13, %p804_p10 }
  0x60   :  { %v407_v26 = vadd.f32 %v406_v25, %v405_v1 }
  0x62   :  { %v409_v29 = vadd.f32 %v408_v56, %v407_v26 }
  0x64   :  { %v411_v31 = vadd.f32 %v410_v28, %v409_v29 }
  0x66   :  { %v413_v33 = vadd.f32 %v412_v30, %v411_v31 }
  0x68   :  { %v415_v34 = vadd.f32 %v414_v32, %v413_v33 }
  0x6a   :  { %416 = vadd.xlane.f32.xlu0 %v415_v34 }
  0xe7   :  { %v287_v37 = vpop.xlane.xlu0 %286 }
  0xe8   :  { %v294_v38 = vadd.f32 %v709_v36, %v287_v37 }
  0xea   :  { %v295_v39 = vmul.f32 0.2, %v294_v38  ;;  %v541_v41 = vpop.xlane.xlu1 %540 }
  0xeb   :  { %v542_v42 = vadd.f32 %v709_v36, %v541_v41 }
  0xec   :  { %v296_v40 = vmax.f32 %v294_v38, %v295_v39 }
  0xed   :  { %v543_v43 = vmul.f32 0.2, %v542_v42 }
  0xee   :  { %547 = vperm.xlu1 %729, %v296_v40  }
  0xef   :  { %v544_v44 = vmax.f32 %v542_v42, %v543_v43 }
  0xf2   :  { %731 = vset.pattern.permute.xlu1 %v872_v12 }
  0xf3   :  { %568 = vperm.xlu1 %731, %v544_v44  }
  0xf7   :  { %v417_v45 = vpop.xlane.xlu0 %416 }
  0xf8   :  { %v418_v46 = vadd.f32 %v709_v36, %v417_v45 }
  0xfa   :  { %v419_v47 = vmul.f32 0.2, %v418_v46 }
  0xfc   :  { %v420_v48 = vmax.f32 %v418_v46, %v419_v47 }
  0xfe   :  { %557 = vperm.xlu0 %730, %v420_v48  }
 0x102   :  { %732 = vset.pattern.permute.xlu0 %v872_v12 }
 0x16d   :  { %v548_v52 = vpop.permute.xlu1 %547 }
 0x16e   :  { %v554_v16 = vmul.f32 %v553_v54, %v548_v52 }
 0x172   :  { %v569_v57 = vpop.permute.xlu1 %568 }
 0x173   :  { %v575_v60 = vmul.f32 %v574_v13, %v569_v57 }
 0x17d   :  { %v558_v58 = vpop.permute.xlu0 %557 }
 0x17e   :  { %v564_v59 = vmul.f32 %v563_v55, %v558_v58 }
 0x180   :  { %v565_v17 = vadd.f32 %v564_v59, %v554_v16 }
 0x182   :  { %v576_v2 = vadd.f32 %v575_v60, %v565_v17 }
 0x184   :  { %v583_v10 = vadd.f32 %v710_v62, %v576_v2 }
 0x186   :  { %v589_v7 = vsub.f32 %v583_v10, %v588_v61  ;;  %v593_v0 = vsub.f32 %v583_v10, %v591_v63  ;;  %585 = vst.msk [vmem:[#allocation10] sm:$0x3] %vm584_vm1, %v583_v10 }
 0x187   :  { %587 = vst.msk [vmem:[#allocation11 - $0x2] sm:$0xc] %vm586_vm2, %v583_v10 }
 0x188   :  { %v598_v3 = vand.u32 2147483647, %v589_v7  ;;  %v600_v4 = vmul.f32 0.5, %v589_v7  ;;  %v617_v5 = vand.u32 2147483647, %v593_v0  ;;  %v619_v6 = vmul.f32 0.5, %v593_v0 }
 0x189   :  { %v595_v8 = vrot.slane %v593_v0, 2 }
 0x18a   :  { %vm599_vm3 = vcmp.lt.f32.partialorder %v598_v3, 1.0  ;;  %v601_v9 = vmul.f32 %v600_v4, %v589_v7  ;;  %v711_v11 = vadd.f32 -0.5, %v598_v3  ;;  %vm618_vm4 = vcmp.lt.f32.partialorder %v617_v5, 1.0 }
 0x18b   :  { %v620_v14 = vmul.f32 %v619_v6, %v593_v0  ;;  %v712_v15 = vadd.f32 -0.5, %v617_v5  ;;  %v597_v18 = vsub.f32 %v589_v7, %v595_v8 }
 0x18c   :  { %v603_v19 = vsel %vm599_vm3, %v601_v9, %v711_v11 }
 0x18d   :  { %v604_v20 = vsel %vm584_vm1, %v603_v19, 0.0  ;;  %v622_v21 = vsel %vm618_vm4, %v620_v14, %v712_v15  ;;  %v639_v22 = vand.u32 2147483647, %v597_v18  ;;  %v641_v23 = vmul.f32 0.5, %v597_v18 }
 0x18e   :  { %605 = vadd.xlane.f32.xlu1 %v604_v20  ;;  %v624_v49 = vrot.slane %v622_v21, 2 }
 0x18f   :  { %vm640_vm5 = vcmp.lt.f32.partialorder %v639_v22, 1.0  ;;  %v642_v50 = vmul.f32 %v641_v23, %v597_v18  ;;  %v713_v24 = vadd.f32 -0.5, %v639_v22 }
 0x190   :  { %v626_v25 = vsel %vm584_vm1, %v624_v49, 0.0 }
 0x191   :  { %627 = vadd.xlane.f32.xlu0 %v626_v25  ;;  %v644_v1 = vsel %vm640_vm5, %v642_v50, %v713_v24 }
 0x192   :  { %v645_v56 = vsel %vm584_vm1, %v644_v1, 0.0 }
 0x193   :  { %646 = vadd.xlane.f32.xlu1 %v645_v56 }
 0x194   :  { %814 = shalt.err (!%p811_p0)
}
 0x195   :  { %s815_s10 = scalar_lea.hbm %s1150_s7, 32 }
 0x196   :  { %p816_p1 = scmp.ne.s32.totalorder %s1150_s7, %s815_s10  ;;  %p819_p2 = scmp.lt.u32.totalorder %s815_s10, %s1150_s7 }
 0x198   :  { %p821_p3 = pnand %p819_p2, %p816_p1 }
 0x19a   :  { %824 = shalt.err (!%p821_p3)
}
 0x19b   :  { %667 = dma.vmem_to_hbm [thread:$0]  %s665_s5, 32, %s1150_s7, [#allocation5]  }
 0x19c   :  { %s825_s18 = scalar_lea.vmem %s675_s28, 32  ;;  %p830_p5 = scmp.lt.s32.totalorder %s675_s28, %s675_s28 }
 0x19d   :  { %p826_p4 = scmp.ne.s32.totalorder %s675_s28, %s825_s18  ;;  %p831_p6 = scmp.lt.s32.totalorder %s825_s18, %s825_s18 }
 0x19f   :  { %p832_p7 = por %p831_p6, %p830_p5 }
 0x1a1   :  { %p833_p8 = pnand %p832_p7, %p826_p4 }
 0x1a3   :  { %836 = shalt.err (!%p833_p8)
}
 0x1a4   :  { %s837_s21 = scalar_lea.hbm %s1151_s8, 32 }
 0x1a5   :  { %p838_p9 = scmp.ne.s32.totalorder %s1151_s8, %s837_s21  ;;  %p841_p10 = scmp.lt.u32.totalorder %s837_s21, %s1151_s8 }
 0x1a7   :  { %p843_p11 = pnand %p841_p10, %p838_p9 }
 0x1a9   :  { %846 = shalt.err (!%p843_p11)
}
 0x1aa   :  { %677 = dma.vmem_to_hbm [thread:$0]  %s675_s28, 32, %s1151_s8, [#allocation12]  }
 0x1ab   :  { %s847_s6 = scalar_lea.hbm %s1152_s9, 16 }
 0x1ac   :  { %p848_p12 = scmp.ne.s32.totalorder %s1152_s9, %s847_s6  ;;  %p851_p13 = scmp.lt.u32.totalorder %s847_s6, %s1152_s9 }
 0x1ae   :  { %p853_p0 = pnand %p851_p13, %p848_p12 }
 0x21b   :  { %v606_v26 = vpop.xlane.xlu1 %605 }
 0x21c   :  { %v607_v27 = vrot.slane %v606_v26, 4 }
 0x21e   :  { %v608_v28 = vadd.f32 %v607_v27, %v606_v26  ;;  %v628_v29 = vpop.xlane.xlu0 %627 }
 0x21f   :  { %v629_v30 = vrot.slane %v628_v29, 4 }
 0x220   :  { %v609_v31 = vrot.slane %v608_v28, 2  ;;  %v647_v32 = vpop.xlane.xlu1 %646 }
 0x221   :  { %v630_v33 = vadd.f32 %v629_v30, %v628_v29  ;;  %v648_v34 = vrot.slane %v647_v32, 4 }
 0x222   :  { %v610_v51 = vadd.f32 %v609_v31, %v608_v28 }
 0x223   :  { %v631_v35 = vrot.slane %v630_v33, 2  ;;  %v649_v36 = vadd.f32 %v648_v34, %v647_v32 }
 0x224   :  { %v611_v37 = vrot.slane %v610_v51, 1 }
 0x225   :  { %v632_v38 = vadd.f32 %v631_v35, %v630_v33  ;;  %v650_v39 = vrot.slane %v649_v36, 2 }
 0x226   :  { %v612_v40 = vadd.f32 %v611_v37, %v610_v51 }
 0x227   :  { %v651_v41 = vadd.f32 %v650_v39, %v649_v36  ;;  %v633_v42 = vrot.slane %v632_v38, 1 }
 0x228   :  { %714 = vpush %v612_v40 }
 0x229   :  { %v634_v43 = vadd.f32 %v633_v42, %v632_v38  ;;  %v652_v44 = vrot.slane %v651_v41, 1 }
 0x22b   :  { %716 = vpush %v634_v43  ;;  %v653_v12 = vadd.f32 %v652_v44, %v651_v41 }
 0x22d   :  { %718 = vpush %v653_v12 }
 0x259   :  { %s715_s8 = spop %714 }
 0x25a   :  { %s614_s23 = smul.f32 0.16666667, %s715_s8 }
 0x25c   :  { %616 = sst [smem:[#allocation13]] %s614_s23  ;;  %s717_s24 = spop %716 }
 0x25d   :  { %s636_s25 = smul.f32 0.16666667, %s717_s24 }
 0x25e   :  { %s719_s26 = spop %718 }
 0x25f   :  { %638 = sst [smem:[#allocation13 + $0x1]] %s636_s25  ;;  %s655_s27 = smul.f32 0.16666667, %s719_s26 }
 0x261   :  { %657 = sst [smem:[#allocation13 + $0x2]] %s655_s27 }
 0x262   :  { %856 = shalt.err (!%p853_p0)
}
 0x263   :  { %s875_s10 = smov [#allocation13]  }
 0x264   :  { %685 = dma.smem_to_hbm %s875_s10, 16, %s1152_s9, [#allocation6]  }
 0x265   :  { %861 = dma.done.wait [#allocation5], 32  }
 0x266   :  { %862 = vsyncadd [#allocation5], 4294967264 }
 0x267   :  { %863 = dma.done.wait [#allocation12], 32  }
 0x268   :  { %864 = vsyncadd [#allocation12], 4294967264 }
 0x269   :  { %865 = dma.done.wait [#allocation6], 16  }
 0x26a   :  { %866 = vsyncadd [#allocation6], 4294967280 }
 0x26b   :  { %695 = sfence }
 0x26c   :  { %696 = vsyncpa [#allocation4], 1 }
 0x26d   :  { %697 = vsyncpa [#allocation8], 1 }
 0x26e   :  { %698 = vsyncpa [#allocation5], 1 }
 0x26f   :  { %699 = vsyncpa [#allocation12], 1 }
 0x270   :  { %700 = vsyncpa [#allocation6], 1 }

</bundles_post_ra>
